<compile_context>
chip_gen: v7x
topology: tpu7x:2x2x1
jax: 0.10.0
libtpu: 0.0.40
codegen_flags: <defaults>
</compile_context>

<pallas_src>
import jax
import jax.numpy as jnp
from jax.experimental import pallas as pl
from jax.experimental.pallas import tpu as pltpu

NEG_SLOPE = 0.01   # PyTorch nn.LeakyReLU() default negative_slope
HID_PAD = 128      # hidden width padded to full lane/sublane tile (do NOT raise to 256)


def _round_up(x, m):
    return (x + m - 1) // m * m


def _leaky_relu(x):
    # Valid because 0 < NEG_SLOPE < 1: max(x, a*x) == leaky_relu(x).  2 VPU ops.
    return jnp.maximum(x, NEG_SLOPE * x)


def qnet_kernel(x_ref,
                w1_ref, b1_ref,
                w2_ref, b2_ref,
                w3_ref, b3_ref,
                w4_ref, b4_ref,
                o_ref):
    """Whole MLP fused, transposed layout: activations are (features, TB) and never
    leave VMEM.  MXU operands in w*.dtype, accumulation + elementwise in f32."""
    cdt = w1_ref.dtype
    x = x_ref[...].astype(cdt)                                             # (OBS_PAD, TB)
    h = jnp.dot(w1_ref[...], x, preferred_element_type=jnp.float32) + b1_ref[...]
    h = _leaky_relu(h)
    h = jnp.dot(w2_ref[...], h.astype(cdt), preferred_element_type=jnp.float32) + b2_ref[...]
    h = _leaky_relu(h)
    h = jnp.dot(w3_ref[...], h.astype(cdt), preferred_element_type=jnp.float32) + b3_ref[...]
    h = _leaky_relu(h)
    o = jnp.dot(w4_ref[...], h.astype(cdt), preferred_element_type=jnp.float32) + b4_ref[...]
    o_ref[...] = o.astype(o_ref.dtype)                                     # (ACT_PAD, TB)


def init_params(key, obs_dim, act_dim, hidden_units=64):
    """PyTorch-Linear-like uniform(-1/sqrt(fan_in), 1/sqrt(fan_in)) init.
    Stored as (in, out); reference computes x @ W + b."""
    dims = [(obs_dim, hidden_units),
            (hidden_units, hidden_units),
            (hidden_units, hidden_units),
            (hidden_units, act_dim)]
    params = {}
    for i, (fan_in, fan_out) in enumerate(dims, start=1):
        key, kw, kb = jax.random.split(key, 3)
        bound = 1.0 / jnp.sqrt(jnp.float32(fan_in))
        params[f"w{i}"] = jax.random.uniform(
            kw, (fan_in, fan_out), jnp.float32, minval=-bound, maxval=bound)
        params[f"b{i}"] = jax.random.uniform(
            kb, (1, fan_out), jnp.float32, minval=-bound, maxval=bound)
    return params


def pack_params(params, compute_dtype=jnp.bfloat16):
    """Transpose weights to (out, in) (PyTorch layout), zero-pad feature dims to
    TPU-friendly sizes, cast weights to the MXU operand dtype (bf16 recommended on
    all of v5e/v6e/v7x).  Biases become f32 (out, 1) columns.  Call once, reuse."""
    obs_dim, hidden = params["w1"].shape
    act_dim = params["w4"].shape[1]
    obs_pad = _round_up(obs_dim, 8)
    act_pad = _round_up(act_dim, 8)

    def padwT(w, rows, cols):
        wt = w.T  # (out, in)
        return jnp.pad(wt, ((0, rows - wt.shape[0]),
                            (0, cols - wt.shape[1]))).astype(compute_dtype)

    def padbT(b, rows):
        bt = b.reshape(-1, 1)  # (out, 1)
        return jnp.pad(bt, ((0, rows - bt.shape[0]), (0, 0))).astype(jnp.float32)

    packed = {
        "w1": padwT(params["w1"], HID_PAD, obs_pad), "b1": padbT(params["b1"], HID_PAD),
        "w2": padwT(params["w2"], HID_PAD, HID_PAD), "b2": padbT(params["b2"], HID_PAD),
        "w3": padwT(params["w3"], HID_PAD, HID_PAD), "b3": padbT(params["b3"], HID_PAD),
        "w4": padwT(params["w4"], act_pad, HID_PAD), "b4": padbT(params["b4"], act_pad),
    }
    meta = dict(obs_dim=obs_dim, act_dim=act_dim, hidden_units=hidden,
                obs_pad=obs_pad, act_pad=act_pad)
    return packed, meta


def qnetwork_forward(x, packed, meta, *, block_batch=2048):
    """x: (B, obs_dim) f32 -> (B, act_dim) f32."""
    B, obs_dim = x.shape
    assert obs_dim == meta["obs_dim"]
    obs_pad, act_pad, act_dim = meta["obs_pad"], meta["act_pad"], meta["act_dim"]
    hid = meta["hidden_units"]

    # Batch is the lane (last) dim of every kernel array, so tiles are multiples of
    # 128.  Force at least 2 (even) grid steps so the "parallel" batch axis uses both
    # TensorCores on v7x; harmless extra zero-rows on v5e/v6e.
    bp_min = _round_up(B, 128)
    TB = min(_round_up(block_batch, 128),
             max(128, _round_up(pl.cdiv(bp_min, 2), 128)))
    nsteps = _round_up(max(pl.cdiv(bp_min, TB), 2), 2)
    Bp = nsteps * TB

    # Transposed, zero-padded input: (obs_pad, Bp).  Padded batch columns / feature
    # rows are zero and are sliced off below (exact for a LeakyReLU MLP).
    xt = jnp.pad(x, ((0, Bp - B), (0, obs_pad - obs_dim))).T

    const = lambda i: (0, 0)   # weights/biases resident in VMEM across all grid steps
    in_specs = [
        pl.BlockSpec((obs_pad, TB), lambda i: (0, i)),   # x^T tile, pipelined over batch
        pl.BlockSpec((HID_PAD, obs_pad), const),
        pl.BlockSpec((HID_PAD, 1), const),
        pl.BlockSpec((HID_PAD, HID_PAD), const),
        pl.BlockSpec((HID_PAD, 1), const),
        pl.BlockSpec((HID_PAD, HID_PAD), const),
        pl.BlockSpec((HID_PAD, 1), const),
        pl.BlockSpec((act_pad, HID_PAD), const),
        pl.BlockSpec((act_pad, 1), const),
    ]
    # Lane-dense output, but only act_pad (=8) sublanes: 16x fewer writeback bytes
    # than a (Bp, 128) padded layout.
    out_spec = pl.BlockSpec((act_pad, TB), lambda i: (0, i))

    # Advisory cost estimate in REAL (unpadded) dims.
    w_itemsize = jnp.dtype(packed["w1"].dtype).itemsize
    weight_elems = obs_dim * hid + 2 * hid * hid + hid * act_dim
    cost = pl.CostEstimate(
        flops=2 * B * weight_elems,
        transcendentals=0,
        bytes_accessed=int(4 * B * obs_dim
                           + w_itemsize * weight_elems
                           + 4 * (3 * hid + act_dim)
                           + 4 * B * act_dim),
    )

    out_t = pl.pallas_call(
        qnet_kernel,
        out_shape=jax.ShapeDtypeStruct((act_pad, Bp), jnp.float32),
        grid=(nsteps,),
        in_specs=in_specs,
        out_specs=out_spec,
        compiler_params=pltpu.CompilerParams(
            dimension_semantics=("parallel",)),   # shards batch tiles across TCs on v7x
        cost_estimate=cost,
    )(xt,
      packed["w1"], packed["b1"],
      packed["w2"], packed["b2"],
      packed["w3"], packed["b3"],
      packed["w4"], packed["b4"])

    # Tiny epilogue: reads only (act_pad, Bp) ~ 32 B/row.
    return out_t[:act_dim, :B].T


def reference_forward(x, params):
    h = x
    for i in range(1, 4):
        h = h @ params[f"w{i}"] + params[f"b{i}"]
        h = jnp.where(h > 0, h, NEG_SLOPE * h)
    return h @ params["w4"] + params["b4"]


if __name__ == "__main__":
    key = jax.random.PRNGKey(0)
    batch, obs_dim, act_dim, hidden = 8, 8, 4, 64

    kx, kp, kx2 = jax.random.split(key, 3)
    x = jax.random.normal(kx, (batch, obs_dim), jnp.float32)
    params = init_params(kp, obs_dim, act_dim, hidden)
    ref = reference_forward(x, params)

    # 1) f32 MXU operands — strict numerical check.
    packed_f32, meta = pack_params(params, jnp.float32)
    out = jax.block_until_ready(qnetwork_forward(x, packed_f32, meta))
    assert out.shape == (batch, act_dim)
    assert jnp.allclose(out, ref, atol=1e-4, rtol=1e-4)

    # 2) bf16 MXU operands (recommended on v5e/v6e/v7x), multi-tile batch grid — loose check.
    batch2 = 300
    x2 = jax.random.normal(kx2, (batch2, obs_dim), jnp.float32)
    ref2 = reference_forward(x2, params)
    packed_bf16, meta = pack_params(params, jnp.bfloat16)
    out2 = jax.block_until_ready(
        qnetwork_forward(x2, packed_bf16, meta, block_batch=256))
    assert out2.shape == (batch2, act_dim)
    assert jnp.allclose(out2, ref2, atol=3e-2, rtol=3e-2)

    print("KERNEL_OK")
</pallas_src>

<mosaic_0001>
module attributes {stable_mosaic.version = 11 : i64} {
  func.func @qnet_kernel(%arg0: i32, %arg1: memref<8x128xf32, #tpu.memory_space<vmem>>, %arg2: memref<128x8xf32, #tpu.memory_space<vmem>>, %arg3: memref<128x1xf32, #tpu.memory_space<vmem>>, %arg4: memref<128x128xf32, #tpu.memory_space<vmem>>, %arg5: memref<128x1xf32, #tpu.memory_space<vmem>>, %arg6: memref<128x128xf32, #tpu.memory_space<vmem>>, %arg7: memref<128x1xf32, #tpu.memory_space<vmem>>, %arg8: memref<8x128xf32, #tpu.memory_space<vmem>>, %arg9: memref<8x1xf32, #tpu.memory_space<vmem>>, %arg10: memref<8x128xf32, #tpu.memory_space<vmem>>) attributes {dimension_semantics = [#tpu.dimension_semantics<parallel>], iteration_bounds = array<i64: 2>, scalar_prefetch = 0 : i64, scratch_operands = 0 : i64, tpu.core_type = #tpu.core_type<tc>, window_params = [{transform_indices = @transform_0, window_bounds = array<i64: 8, 128>}, {pipeline_mode = #tpu.pipeline_mode<synchronous>, transform_indices = @transform_1, window_bounds = array<i64: 128, 8>}, {pipeline_mode = #tpu.pipeline_mode<synchronous>, transform_indices = @transform_2, window_bounds = array<i64: 128, 1>}, {pipeline_mode = #tpu.pipeline_mode<synchronous>, transform_indices = @transform_3, window_bounds = array<i64: 128, 128>}, {pipeline_mode = #tpu.pipeline_mode<synchronous>, transform_indices = @transform_4, window_bounds = array<i64: 128, 1>}, {pipeline_mode = #tpu.pipeline_mode<synchronous>, transform_indices = @transform_5, window_bounds = array<i64: 128, 128>}, {pipeline_mode = #tpu.pipeline_mode<synchronous>, transform_indices = @transform_6, window_bounds = array<i64: 128, 1>}, {pipeline_mode = #tpu.pipeline_mode<synchronous>, transform_indices = @transform_7, window_bounds = array<i64: 8, 128>}, {pipeline_mode = #tpu.pipeline_mode<synchronous>, transform_indices = @transform_8, window_bounds = array<i64: 8, 1>}, {transform_indices = @transform_9, window_bounds = array<i64: 8, 128>}]} {
    %c0 = arith.constant 0 : index
    %c0_0 = arith.constant 0 : index
    %0 = vector.load %arg1[%c0, %c0_0] : memref<8x128xf32, #tpu.memory_space<vmem>>, vector<8x128xf32>
    %c0_1 = arith.constant 0 : index
    %c0_2 = arith.constant 0 : index
    %1 = vector.load %arg2[%c0_1, %c0_2] : memref<128x8xf32, #tpu.memory_space<vmem>>, vector<128x8xf32>
    %cst = arith.constant dense<0.000000e+00> : vector<128x128xf32>
    %2 = tpu.matmul %1, %0, %cst {dimension_numbers = #tpu.dot_dimension_numbers<[1], [0], [0], [1], [0, 0, 1, 1], [], []>} : vector<128x8xf32>, vector<8x128xf32>, vector<128x128xf32> -> vector<128x128xf32>
    %c0_3 = arith.constant 0 : index
    %c0_4 = arith.constant 0 : index
    %3 = vector.load %arg3[%c0_3, %c0_4] : memref<128x1xf32, #tpu.memory_space<vmem>>, vector<128x1xf32>
    %4 = vector.broadcast %3 : vector<128x1xf32> to vector<128x128xf32>
    %5 = arith.addf %2, %4 : vector<128x128xf32>
    %cst_5 = arith.constant 0.00999999977 : f32
    %6 = vector.broadcast %cst_5 : f32 to vector<128x128xf32>
    %7 = arith.mulf %6, %5 : vector<128x128xf32>
    %8 = arith.maximumf %5, %7 : vector<128x128xf32>
    %c0_6 = arith.constant 0 : index
    %c0_7 = arith.constant 0 : index
    %9 = vector.load %arg4[%c0_6, %c0_7] : memref<128x128xf32, #tpu.memory_space<vmem>>, vector<128x128xf32>
    %cst_8 = arith.constant dense<0.000000e+00> : vector<128x128xf32>
    %10 = tpu.matmul %9, %8, %cst_8 {dimension_numbers = #tpu.dot_dimension_numbers<[1], [0], [0], [1], [0, 0, 1, 1], [], []>} : vector<128x128xf32>, vector<128x128xf32>, vector<128x128xf32> -> vector<128x128xf32>
    %c0_9 = arith.constant 0 : index
    %c0_10 = arith.constant 0 : index
    %11 = vector.load %arg5[%c0_9, %c0_10] : memref<128x1xf32, #tpu.memory_space<vmem>>, vector<128x1xf32>
    %12 = vector.broadcast %11 : vector<128x1xf32> to vector<128x128xf32>
    %13 = arith.addf %10, %12 : vector<128x128xf32>
    %cst_11 = arith.constant 0.00999999977 : f32
    %14 = vector.broadcast %cst_11 : f32 to vector<128x128xf32>
    %15 = arith.mulf %14, %13 : vector<128x128xf32>
    %16 = arith.maximumf %13, %15 : vector<128x128xf32>
    %c0_12 = arith.constant 0 : index
    %c0_13 = arith.constant 0 : index
    %17 = vector.load %arg6[%c0_12, %c0_13] : memref<128x128xf32, #tpu.memory_space<vmem>>, vector<128x128xf32>
    %cst_14 = arith.constant dense<0.000000e+00> : vector<128x128xf32>
    %18 = tpu.matmul %17, %16, %cst_14 {dimension_numbers = #tpu.dot_dimension_numbers<[1], [0], [0], [1], [0, 0, 1, 1], [], []>} : vector<128x128xf32>, vector<128x128xf32>, vector<128x128xf32> -> vector<128x128xf32>
    %c0_15 = arith.constant 0 : index
    %c0_16 = arith.constant 0 : index
    %19 = vector.load %arg7[%c0_15, %c0_16] : memref<128x1xf32, #tpu.memory_space<vmem>>, vector<128x1xf32>
    %20 = vector.broadcast %19 : vector<128x1xf32> to vector<128x128xf32>
    %21 = arith.addf %18, %20 : vector<128x128xf32>
    %cst_17 = arith.constant 0.00999999977 : f32
    %22 = vector.broadcast %cst_17 : f32 to vector<128x128xf32>
    %23 = arith.mulf %22, %21 : vector<128x128xf32>
    %24 = arith.maximumf %21, %23 : vector<128x128xf32>
    %c0_18 = arith.constant 0 : index
    %c0_19 = arith.constant 0 : index
    %25 = vector.load %arg8[%c0_18, %c0_19] : memref<8x128xf32, #tpu.memory_space<vmem>>, vector<8x128xf32>
    %cst_20 = arith.constant dense<0.000000e+00> : vector<8x128xf32>
    %26 = tpu.matmul %25, %24, %cst_20 {dimension_numbers = #tpu.dot_dimension_numbers<[1], [0], [0], [1], [0, 0, 1, 1], [], []>} : vector<8x128xf32>, vector<128x128xf32>, vector<8x128xf32> -> vector<8x128xf32>
    %c0_21 = arith.constant 0 : index
    %c0_22 = arith.constant 0 : index
    %27 = vector.load %arg9[%c0_21, %c0_22] : memref<8x1xf32, #tpu.memory_space<vmem>>, vector<8x1xf32>
    %28 = vector.broadcast %27 : vector<8x1xf32> to vector<8x128xf32>
    %29 = arith.addf %26, %28 : vector<8x128xf32>
    %c0_23 = arith.constant 0 : index
    %c0_24 = arith.constant 0 : index
    %30 = vector.load %arg10[%c0_23, %c0_24] : memref<8x128xf32, #tpu.memory_space<vmem>>, vector<8x128xf32>
    tpu.vector_store %arg10[%c0_23, %c0_24], %29 {strides = array<i32>} : memref<8x128xf32, #tpu.memory_space<vmem>>, vector<8x128xf32>,
    return
  }
  func.func @transform_0(%arg0: i32) -> (i32, i32) {
    %c0_i32 = arith.constant 0 : i32
    %c0_i32_0 = arith.constant 0 : i32
    return %c0_i32, %arg0 : i32, i32
  }
  func.func @transform_1(%arg0: i32) -> (i32, i32) {
    %c0_i32 = arith.constant 0 : i32
    %c0_i32_0 = arith.constant 0 : i32
    %c0_i32_1 = arith.constant 0 : i32
    return %c0_i32, %c0_i32_0 : i32, i32
  }
  func.func @transform_2(%arg0: i32) -> (i32, i32) {
    %c0_i32 = arith.constant 0 : i32
    %c0_i32_0 = arith.constant 0 : i32
    %c0_i32_1 = arith.constant 0 : i32
    return %c0_i32, %c0_i32_0 : i32, i32
  }
  func.func @transform_3(%arg0: i32) -> (i32, i32) {
    %c0_i32 = arith.constant 0 : i32
    %c0_i32_0 = arith.constant 0 : i32
    %c0_i32_1 = arith.constant 0 : i32
    return %c0_i32, %c0_i32_0 : i32, i32
  }
  func.func @transform_4(%arg0: i32) -> (i32, i32) {
    %c0_i32 = arith.constant 0 : i32
    %c0_i32_0 = arith.constant 0 : i32
    %c0_i32_1 = arith.constant 0 : i32
    return %c0_i32, %c0_i32_0 : i32, i32
  }
  func.func @transform_5(%arg0: i32) -> (i32, i32) {
    %c0_i32 = arith.constant 0 : i32
    %c0_i32_0 = arith.constant 0 : i32
    %c0_i32_1 = arith.constant 0 : i32
    return %c0_i32, %c0_i32_0 : i32, i32
  }
  func.func @transform_6(%arg0: i32) -> (i32, i32) {
    %c0_i32 = arith.constant 0 : i32
    %c0_i32_0 = arith.constant 0 : i32
    %c0_i32_1 = arith.constant 0 : i32
    return %c0_i32, %c0_i32_0 : i32, i32
  }
  func.func @transform_7(%arg0: i32) -> (i32, i32) {
    %c0_i32 = arith.constant 0 : i32
    %c0_i32_0 = arith.constant 0 : i32
    %c0_i32_1 = arith.constant 0 : i32
    return %c0_i32, %c0_i32_0 : i32, i32
  }
  func.func @transform_8(%arg0: i32) -> (i32, i32) {
    %c0_i32 = arith.constant 0 : i32
    %c0_i32_0 = arith.constant 0 : i32
    %c0_i32_1 = arith.constant 0 : i32
    return %c0_i32, %c0_i32_0 : i32, i32
  }
  func.func @transform_9(%arg0: i32) -> (i32, i32) {
    %c0_i32 = arith.constant 0 : i32
    %c0_i32_0 = arith.constant 0 : i32
    return %c0_i32, %arg0 : i32, i32
  }
}

</mosaic_0001>

<bundles_post_ra>
// kernel: tpu_custom_call.1
= control target key start
LH: loop header
LB: loop body
LE: loop exit
PB: predicated region body
PF: predicated region fallthrough
CT: control target
= control target key end

     0   :  { %14 = vsyncpa [#allocation3], 0  ;;  %s2363_s0 = inlined_call_operand.vmem [shape: f32[8,256], index: 0, kind: input, shape index: {}]   ;;  %s2364_s1 = inlined_call_operand.vmem [shape: f32[128,8], index: 1, kind: input, shape index: {}]   ;;  %s2365_s2 = inlined_call_operand.vmem [shape: f32[128,1], index: 2, kind: input, shape index: {}]   ;;  %s2366_s3 = inlined_call_operand.vmem [shape: f32[128,128], index: 3, kind: input, shape index: {}]   ;;  %s2367_s4 = inlined_call_operand.vmem [shape: f32[128,1], index: 4, kind: input, shape index: {}]   ;;  %s2368_s5 = inlined_call_operand.vmem [shape: f32[128,128], index: 5, kind: input, shape index: {}]   ;;  %s2369_s6 = inlined_call_operand.vmem [shape: f32[128,1], index: 6, kind: input, shape index: {}]   ;;  %s2370_s7 = inlined_call_operand.vmem [shape: f32[8,128], index: 7, kind: input, shape index: {}]   ;;  %s2371_s8 = inlined_call_operand.vmem [shape: f32[8,1], index: 8, kind: input, shape index: {}]   ;;  %s2372_s9 = inlined_call_operand.hbm [shape: f32[8,256], index: 9, kind: output, shape index: {}]  }
   0x1   :  { %16 = vsyncpa [#allocation3 + $0x1], 0  ;;  %s1945_s30 = smov 0   ;;  %s1947_s10 = smov 0  }
   0x2   :  { %s1949_s11 = smov 0   ;;  %s1951_s12 = smov 0  }
   0x3 LB: > { %s1966_s13 = sadd.s32 4294967295, %s1888_s12   ;;  %s1396_s14 = sadd.s32 4294967294, %s1888_s12   ;;  %s1888_s12 = sphi %s1951_s12, %s2378_s12   ;;  %s1884_s11 = sphi %s1949_s11, %s2377_s11   ;;  %s1880_s10 = sphi %s1947_s10, %s2376_s10   ;;  %s1876_s30 = sphi %s1945_s30, %s2375_s30  }
   0x4   : > { %s1970_s15 = sadd.s32 1, %s1888_s12   ;;  %s223_s16 = sadd.s32 1, %s1884_s11 }
   0x5   : > { %s220_s17 = ssub.s32 %s1888_s12, %s1970_s15  ;;  %p233_p0 = scmp.ne.s32.totalorder %s1884_s11, %s1880_s10 }
   0x6   : > { %p221_p1 = scmp.eq.s32.totalorder %s220_s17, 0  ;;  %p234_p2 = scmp.eq.s32.totalorder %s1966_s13, 1 }
   0x7   : > { %p239_p3 = scmp.ne.s32.totalorder %s1880_s10, %s1876_s30  ;;  %p240_p4 = scmp.eq.s32.totalorder %s1396_s14, 1 }
   0x8   : > { %s1981_s18 = scalar_select %p221_p1, %s1884_s11, %s223_s16  }
   0x9   : > { %p1983_p5 = por %p234_p2, %p233_p0  ;;  %p1987_p6 = por %p240_p4, %p239_p3 }
   0xa   : > { %p1399_p7 = scmp.ge.s32.totalorder %s1888_s12, 1  ;;  %p289_p8 = scmp.lt.s32.totalorder %s1888_s12, 3 }
   0xc   : > { %p290_p9 = pnand %p1399_p7, %p289_p8 }
   0xd   : > { %v347_v0 = vld [vmem:[%s2365_s2 + $0x10] sm:$0xff] (!%p290_p9)  ;;  %v345_v1 = vld [vmem:[%s2365_s2] sm:$0xff] (!%p290_p9)  ;;  %p324_p10 = scmp.lt.s32.totalorder (!%p290_p9), %s1966_s13, 1  ;;  %vm441_vm0 = vcmask (!%p290_p9), 64512   ;;  %v1890_v2 = vmov (!%p290_p9), 0   ;;  %v348_v4 = vld [vmem:[%s2365_s2 + $0x18] sm:$0xff] (!%p290_p9) }
   0xe   : > { %293 = sbr.rel (%p290_p9) target bundleno = 1014 (0x3f6), region = 56  ;;  %1825 = vset.pattern.permute.xlu1 (!%p290_p9), %v1890_v2  ;;  %1824 = vset.pattern.permute.xlu0 (!%p290_p9), %v1890_v2  ;;  %v329_v3 = vld [vmem:[%s2364_s1] sm:$0xff] (!%p290_p9)  ;;  %v346_v5 = vld [vmem:[%s2365_s2 + $0x8] sm:$0xff] (!%p290_p9)  ;;  %v331_v10 = vld [vmem:[%s2364_s1 + $0x10] sm:$0xff] (!%p290_p9)  ;;  %vm1892_vm1 = vmmov (!%p290_p9), 0  }
   0xf   : > { %373 = vperm.xlu1 (!%p290_p9), %1825, %v347_v0   ;;  %363 = vperm.xlu0 (!%p290_p9), %1824, %v345_v1   ;;  %v330_v7 = vld [vmem:[%s2364_s1 + $0x8] sm:$0xff] (!%p290_p9)  ;;  %v349_v9 = vld [vmem:[%s2365_s2 + $0x20] sm:$0xff] (!%p290_p9)  ;;  %v332_v11 = vld [vmem:[%s2364_s1 + $0x18] sm:$0xff] (!%p290_p9) }
  0x10   : > { %1522 = vmatprep.mubr.msk.f32.mxu0 (!%p290_p9), %vm441_vm0, %v329_v3  ;;  %v350_v8 = vld [vmem:[%s2365_s2 + $0x28] sm:$0xff] (!%p290_p9)  ;;  %v352_v12 = vld [vmem:[%s2365_s2 + $0x38] sm:$0xff] (!%p290_p9)  ;;  %v351_v13 = vld [vmem:[%s2365_s2 + $0x30] sm:$0xff] (!%p290_p9) }
  0x11   : > { %v333_v14 = vld [vmem:[%s2364_s1 + $0x20] sm:$0xff] (!%p290_p9)  ;;  %v334_v15 = vld [vmem:[%s2364_s1 + $0x28] sm:$0xff] (!%p290_p9)  ;;  %v335_v18 = vld [vmem:[%s2364_s1 + $0x30] sm:$0xff] (!%p290_p9) }
  0x12   : > { %v354_v16 = vld [vmem:[%s2365_s2 + $0x48] sm:$0xff] (!%p290_p9)  ;;  %v353_v17 = vld [vmem:[%s2365_s2 + $0x40] sm:$0xff] (!%p290_p9)  ;;  %v336_v19 = vld [vmem:[%s2364_s1 + $0x38] sm:$0xff] (!%p290_p9) }
  0x13   : > { %378 = vperm.xlu1 (!%p290_p9), %1825, %v348_v4   ;;  %368 = vperm.xlu0 (!%p290_p9), %1824, %v346_v5   ;;  %v356_v20 = vld [vmem:[%s2365_s2 + $0x58] sm:$0xff] (!%p290_p9)  ;;  %v355_v21 = vld [vmem:[%s2365_s2 + $0x50] sm:$0xff] (!%p290_p9)  ;;  %v337_v22 = vld [vmem:[%s2364_s1 + $0x40] sm:$0xff] (!%p290_p9) }
  0x14   : > { %v338_v23 = vld [vmem:[%s2364_s1 + $0x48] sm:$0xff] (!%p290_p9)  ;;  %v357_v25 = vld [vmem:[%s2365_s2 + $0x60] sm:$0xff] (!%p290_p9)  ;;  %v339_v26 = vld [vmem:[%s2364_s1 + $0x50] sm:$0xff] (!%p290_p9) }
  0x15   : > { %s325_s27 = scalar_select %p324_p10, %s1966_s13, 1  ;;  %v358_v24 = vld [vmem:[%s2365_s2 + $0x68] sm:$0xff]  ;;  %v340_v27 = vld [vmem:[%s2364_s1 + $0x58] sm:$0xff]  ;;  %v359_v29 = vld [vmem:[%s2365_s2 + $0x70] sm:$0xff] }
  0x16   : > { %v360_v28 = vld [vmem:[%s2365_s2 + $0x78] sm:$0xff]  ;;  %v341_v30 = vld [vmem:[%s2364_s1 + $0x60] sm:$0xff]  ;;  %v342_v31 = vld [vmem:[%s2364_s1 + $0x68] sm:$0xff] }
  0x17   : > { %s1401_s17 = sshll.u32 %s325_s27, 3  ;;  %388 = vperm.xlu1 %1825, %v350_v8   ;;  %383 = vperm.xlu0 %1824, %v349_v9   ;;  %v684_v32 = vld [vmem:[%s2367_s4 + $0x8] sm:$0xff]  ;;  %v683_v33 = vld [vmem:[%s2367_s4] sm:$0xff]  ;;  %v343_v34 = vld [vmem:[%s2364_s1 + $0x70] sm:$0xff]  ;;  %s321_s27 = sand.u32 1, %s1880_s10  }
  0x18   : > { %s327_s23 = scalar_lea.vmem %s2363_s0, %s1401_s17  ;;  %v344_v35 = vld [vmem:[%s2364_s1 + $0x78] sm:$0xff]  ;;  %v685_v37 = vld [vmem:[%s2367_s4 + $0x10] sm:$0xff]  ;;  %v688_v38 = vld [vmem:[%s2367_s4 + $0x28] sm:$0xff]  ;;  %s1400_s16 = sshll.u32 %s321_s27, 3 }
  0x19   : > { %v328_v6 = vld [vmem:[%s327_s23] sm:$0xff]  ;;  %v686_v36 = vld [vmem:[%s2367_s4 + $0x18] sm:$0xff]  ;;  %v689_v41 = vld [vmem:[%s2367_s4 + $0x30] sm:$0xff]  ;;  %s1419_s17 = sshll.u32 %s1966_s13, 7  ;;  %s323_s21 = scalar_lea.vmem [#allocation2], %s1400_s16 }
  0x1a   : > { %1520 = vmatprep.subr.mxu0 %v328_v6  ;;  %v687_v39 = vld [vmem:[%s2367_s4 + $0x20] sm:$0xff]  ;;  %v690_v40 = vld [vmem:[%s2367_s4 + $0x38] sm:$0xff]  ;;  %v692_v42 = vld [vmem:[%s2367_s4 + $0x48] sm:$0xff]  ;;  %s1337_s22 = sshll.u32 %s323_s21, 4  ;;  %s2321_s25 = scalar_lea.hbm %s2372_s9, %s1419_s17  ;;  %s2323_s22 = int_to_ptr.vmem [resolvable:$true] %s1337_s22 }
  0x1b   : > { %1521 = vmatpush3.msra.mxu0 %v328_v6  ;;  %398 = vperm.xlu1 %1825, %v352_v12   ;;  %v691_v43 = vld [vmem:[%s2367_s4 + $0x40] sm:$0xff]  ;;  %v694_v44 = vld [vmem:[%s2367_s4 + $0x58] sm:$0xff]  ;;  %v693_v45 = vld [vmem:[%s2367_s4 + $0x50] sm:$0xff]  ;;  %s1324_s26 = scalar_lea.sflag [#allocation3], %s321_s27  ;;  %s1826_s28 = scalar_lea.vmem %s2323_s22, 128 }
  0x1c   : > { %1523 = vmatmul.mubr.msk.f32.vlgmr.msra.gmra.mrb[0].mxu0 %vm441_vm0, %v330_v7  ;;  %393 = vperm.xlu0 %1824, %v351_v13   ;;  %v696_v46 = vld [vmem:[%s2367_s4 + $0x68] sm:$0xff]  ;;  %v695_v47 = vld [vmem:[%s2367_s4 + $0x60] sm:$0xff]  ;;  %v698_v48 = vld [vmem:[%s2367_s4 + $0x78] sm:$0xff]  ;;  %p1827_p11 = scmp.ne.s32.totalorder %s2323_s22, %s1826_s28  ;;  %s1894_s13 = smov [#allocation2]  }
  0x1d   : > { %1525 = vmatprep.mubr.msk.f32.mxu0 %vm441_vm0, %v331_v10  ;;  %v697_v49 = vld [vmem:[%s2367_s4 + $0x70] sm:$0xff]  ;;  %v973_v50 = vld [vmem:[%s2369_s6 + $0x8] sm:$0xff]  ;;  %v972_v51 = vld [vmem:[%s2369_s6] sm:$0xff]  ;;  %s1830_s29 = sshll.u32 %s1894_s13, 4  ;;  %s1831_s29 = int_to_ptr.vmem [resolvable:$false] %s1830_s29 }
  0x1e   : > { %v975_v52 = vld [vmem:[%s2369_s6 + $0x18] sm:$0xff]  ;;  %v974_v53 = vld [vmem:[%s2369_s6 + $0x10] sm:$0xff]  ;;  %v977_v54 = vld [vmem:[%s2369_s6 + $0x28] sm:$0xff]  ;;  %p1828_p12 = pnand %p1827_p11, %p1983_p5  ;;  %s1832_s14 = scalar_lea.vmem %s1831_s29, 256 }
  0x1f   : > { %408 = vperm.xlu1 %1825, %v354_v16   ;;  %v976_v55 = vld [vmem:[%s2369_s6 + $0x20] sm:$0xff]  ;;  %v979_v56 = vld [vmem:[%s2369_s6 + $0x38] sm:$0xff]  ;;  %v978_v57 = vld [vmem:[%s2369_s6 + $0x30] sm:$0xff]  ;;  %p1833_p0 = scmp.lt.s32.totalorder %s2323_s22, %s1831_s29  ;;  %p1834_p1 = scmp.lt.s32.totalorder %s1832_s14, %s1826_s28 }
  0x20   : > { %1526 = vmatmul.mubr.msk.f32.gmra.mrb[2].mxu0 %vm441_vm0, %v332_v11  ;;  %403 = vperm.xlu0 %1824, %v353_v17   ;;  %v981_v58 = vld [vmem:[%s2369_s6 + $0x48] sm:$0xff]  ;;  %v980_v59 = vld [vmem:[%s2369_s6 + $0x40] sm:$0xff]  ;;  %v983_v60 = vld [vmem:[%s2369_s6 + $0x58] sm:$0xff]  ;;  %p1829_p13 = pneg %p1828_p12 }
  0x21   : > { %1528 = vmatprep.mubr.msk.f32.mxu0 %vm441_vm0, %v333_v14  ;;  %v982_v61 = vld [vmem:[%s2369_s6 + $0x50] sm:$0xff]  ;;  %v985_v62 = vld [vmem:[%s2369_s6 + $0x68] sm:$0xff]  ;;  %v984_v63 = vld [vmem:[%s2369_s6 + $0x60] sm:$0xff]  ;;  %p1835_p2 = por %p1834_p1, %p1833_p0 }
  0x22   : > { %v987_v0 = vld [vmem:[%s2369_s6 + $0x78] sm:$0xff]  ;;  %v986_v1 = vld [vmem:[%s2369_s6 + $0x70] sm:$0xff]  ;;  %v1246_v2 = vld [vmem:[%s2371_s8] sm:$0xff] }
  0x23   : > { %418 = vperm.xlu1 %1825, %v356_v20   ;;  %v667_v3 = vld [vmem:[%s2366_s3] sm:$0xff]  ;;  %p1836_p3 = pnand %p1835_p2, %p1829_p13 }
  0x24   : > { %1529 = vmatmul.mubr.msk.f32.gmra.mrb[4].mxu0 %vm441_vm0, %v334_v15  ;;  %413 = vperm.xlu0 %1824, %v355_v21  }
  0x25   : > { %1531 = vmatprep.mubr.msk.f32.mxu0 %vm441_vm0, %v335_v18  ;;  %1578 = vmatprep.mubr.f32.mxu1 %v667_v3 }
  0x27   : > { %428 = vperm.xlu1 %1825, %v358_v24  }
  0x28   : > { %1532 = vmatmul.mubr.msk.f32.gmra.mrb[6].mxu0 %vm441_vm0, %v336_v19  ;;  %423 = vperm.xlu0 %1824, %v357_v25  }
  0x29   : > { %1534 = vmatprep.mubr.msk.f32.mxu0 %vm441_vm0, %v337_v22 }
  0x2b   : > { %438 = vperm.xlu1 %1825, %v360_v28  }
  0x2c   : > { %1535 = vmatmul.mubr.msk.f32.gmra.mrb[8].mxu0 %vm441_vm0, %v338_v23  ;;  %433 = vperm.xlu0 %1824, %v359_v29  }
  0x2d   : > { %1537 = vmatprep.mubr.msk.f32.mxu0 %vm441_vm0, %v339_v26 }
  0x2f   : > { %706 = vperm.xlu1 %1825, %v684_v32  }
  0x30   : > { %1538 = vmatmul.mubr.msk.f32.gmra.mrb[10].mxu0 %vm441_vm0, %v340_v27  ;;  %701 = vperm.xlu0 %1824, %v683_v33  }
  0x31   : > { %1540 = vmatprep.mubr.msk.f32.mxu0 %vm441_vm0, %v341_v30 }
  0x33   : > { %716 = vperm.xlu1 %1825, %v686_v36  }
  0x34   : > { %1541 = vmatmul.mubr.msk.f32.gmra.mrb[12].mxu0 %vm441_vm0, %v342_v31  ;;  %711 = vperm.xlu0 %1824, %v685_v37  }
  0x35   : > { %1543 = vmatprep.mubr.msk.f32.mxu0 %vm441_vm0, %v343_v34 }
  0x37   : > { %726 = vperm.xlu1 %1825, %v688_v38  }
  0x38   : > { %1544 = vmatmul.mubr.msk.f32.gmra.mrb[14].mxu0 %vm441_vm0, %v344_v35  ;;  %721 = vperm.xlu0 %1824, %v687_v39  }
  0x3b   : > { %736 = vperm.xlu1 %1825, %v690_v40  }
  0x3c   : > { %731 = vperm.xlu0 %1824, %v689_v41  }
  0x3f   : > { %746 = vperm.xlu1 %1825, %v692_v42  }
  0x40   : > { %741 = vperm.xlu0 %1824, %v691_v43  }
  0x43   : > { %756 = vperm.xlu1 %1825, %v694_v44  }
  0x44   : > { %751 = vperm.xlu0 %1824, %v693_v45  }
  0x47   : > { %766 = vperm.xlu1 %1825, %v696_v46  }
  0x48   : > { %761 = vperm.xlu0 %1824, %v695_v47  }
  0x4b   : > { %776 = vperm.xlu1 %1825, %v698_v48  }
  0x4c   : > { %771 = vperm.xlu0 %1824, %v697_v49  }
  0x4f   : > { %995 = vperm.xlu1 %1825, %v973_v50  }
  0x50   : > { %990 = vperm.xlu0 %1824, %v972_v51  }
  0x53   : > { %1005 = vperm.xlu1 %1825, %v975_v52  }
  0x54   : > { %1000 = vperm.xlu0 %1824, %v974_v53  }
  0x57   : > { %1015 = vperm.xlu1 %1825, %v977_v54  }
  0x58   : > { %1010 = vperm.xlu0 %1824, %v976_v55  }
  0x5b   : > { %1025 = vperm.xlu1 %1825, %v979_v56  }
  0x5c   : > { %1020 = vperm.xlu0 %1824, %v978_v57  }
  0x5f   : > { %1035 = vperm.xlu1 %1825, %v981_v58  }
  0x60   : > { %1030 = vperm.xlu0 %1824, %v980_v59  }
  0x63   : > { %1045 = vperm.xlu1 %1825, %v983_v60  }
  0x64   : > { %1040 = vperm.xlu0 %1824, %v982_v61  }
  0x67   : > { %1055 = vperm.xlu1 %1825, %v985_v62  }
  0x68   : > { %1050 = vperm.xlu0 %1824, %v984_v63  }
  0x6b   : > { %1065 = vperm.xlu1 %1825, %v987_v0  }
  0x6c   : > { %1060 = vperm.xlu0 %1824, %v986_v1  }
  0x70   : > { %1249 = vperm.xlu0 %1824, %v1246_v2  }
  0x8e   : > { %v374_v4 = vpop.permute.xlu1 %373  ;;  %v364_v5 = vpop.permute.xlu0 %363 }
  0x92   : > { %v379_v6 = vpop.permute.xlu1 %378  ;;  %v369_v7 = vpop.permute.xlu0 %368 }
  0x96   : > { %v389_v8 = vpop.permute.xlu1 %388  ;;  %v384_v9 = vpop.permute.xlu0 %383 }
  0x9a   : > { %v399_v15 = vpop.permute.xlu1 %398 }
  0x9b   : > { %v394_v17 = vpop.permute.xlu0 %393 }
  0x9e   : > { %v409_v31 = vpop.permute.xlu1 %408 }
  0x9f   : > { %v404_v34 = vpop.permute.xlu0 %403 }
  0xa2   : > { %v419_v45 = vpop.permute.xlu1 %418 }
  0xa3   : > { %v414_v49 = vpop.permute.xlu0 %413 }
  0xa6   : > { %v429_v62 = vpop.permute.xlu1 %428 }
  0xa7   : > { %v424_v1 = vpop.permute.xlu0 %423 }
  0xef   : > { %v1524_v10 = vpop.f32.mrb[0].mxu0 }
  0xf0   : > { %v562_v11 = vadd.f32 %v1524_v10, %v369_v7  ;;  %v556_v12 = vpop.f32.mrb[1].mxu0 }
  0xf1   : > { %v557_v14 = vadd.f32 %v556_v12, %v364_v5  ;;  %v439_v12 = vpop.permute.xlu1 %438 }
  0xf2   : > { %v636_v13 = vmul.f32 0.01, %v562_v11 }
  0xf3   : > { %v1527_v16 = vpop.f32.mrb[2].mxu0  ;;  %v635_v19 = vmul.f32 0.01, %v557_v14 }
  0xf4   : > { %v652_v18 = vmax.f32 %v562_v11, %v636_v13  ;;  %v572_v20 = vadd.f32 %v1527_v16, %v379_v6  ;;  %v566_v21 = vpop.f32.mrb[3].mxu0  ;;  %v434_v16 = vpop.permute.xlu0 %433 }
  0xf5   : > { %v567_v22 = vadd.f32 %v566_v21, %v374_v4  ;;  %v651_v23 = vmax.f32 %v557_v14, %v635_v19 }
  0xf6   : > { %v638_v24 = vmul.f32 0.01, %v572_v20 }
  0xf7   : > { %v637_v25 = vmul.f32 0.01, %v567_v22  ;;  %v1530_v26 = vpop.f32.mrb[4].mxu0  ;;  %v1693_v30 = vpack.c.bf16 %v652_v18, %v651_v23 }
  0xf8   : > { %v654_v27 = vmax.f32 %v572_v20, %v638_v24  ;;  %v582_v28 = vadd.f32 %v1530_v26, %v389_v8  ;;  %v576_v29 = vpop.f32.mrb[5].mxu0 }
  0xf9   : > { %v653_v32 = vmax.f32 %v567_v22, %v637_v25  ;;  %v577_v33 = vadd.f32 %v576_v29, %v384_v9  ;;  %1694 = vmatprep.subr.bf16.mxu1 %v1693_v30  ;;  %v669_v29 = vld [vmem:[%s2366_s3 + $0x10] sm:$0xff] }
  0xfa   : > { %v640_v35 = vmul.f32 0.01, %v582_v28  ;;  %1696 = vmatpush3.bf16.msra.mxu1 %v1693_v30  ;;  %v670_v30 = vld [vmem:[%s2366_s3 + $0x18] sm:$0xff] }
  0xfb   : > { %v639_v36 = vmul.f32 0.01, %v577_v33  ;;  %v1533_v37 = vpop.f32.mrb[6].mxu0  ;;  %v1697_v38 = vpack.c.bf16 %v654_v27, %v653_v32  ;;  %v672_v32 = vld [vmem:[%s2366_s3 + $0x28] sm:$0xff] }
  0xfc   : > { %v656_v39 = vmax.f32 %v582_v28, %v640_v35  ;;  %v592_v40 = vadd.f32 %v1533_v37, %v399_v15  ;;  %v586_v41 = vpop.f32.mrb[7].mxu0  ;;  %v668_v28 = vld [vmem:[%s2366_s3 + $0x8] sm:$0xff]  ;;  %v675_v35 = vld [vmem:[%s2366_s3 + $0x40] sm:$0xff]  ;;  %v677_v37 = vld [vmem:[%s2366_s3 + $0x50] sm:$0xff] }
  0xfd   : > { %v655_v42 = vmax.f32 %v577_v33, %v639_v36  ;;  %v587_v43 = vadd.f32 %v586_v41, %v394_v17  ;;  %1698 = vmatprep.subr.bf16.mxu1 %v1697_v38  ;;  %v673_v33 = vld [vmem:[%s2366_s3 + $0x30] sm:$0xff]  ;;  %v676_v36 = vld [vmem:[%s2366_s3 + $0x48] sm:$0xff] }
  0xfe   : > { %v642_v44 = vmul.f32 0.01, %v592_v40  ;;  %1700 = vmatpush3.bf16.msra.mxu1 %v1697_v38  ;;  %v678_v38 = vld [vmem:[%s2366_s3 + $0x58] sm:$0xff]  ;;  %v681_v41 = vld [vmem:[%s2366_s3 + $0x70] sm:$0xff] }
  0xff   : > { %v641_v46 = vmul.f32 0.01, %v587_v43  ;;  %v1536_v47 = vpop.f32.mrb[8].mxu0  ;;  %v1701_v48 = vpack.c.bf16 %v656_v39, %v655_v42  ;;  %v679_v39 = vld [vmem:[%s2366_s3 + $0x60] sm:$0xff]  ;;  %v682_v42 = vld [vmem:[%s2366_s3 + $0x78] sm:$0xff] }
 0x100   : > { %v658_v50 = vmax.f32 %v592_v40, %v642_v44  ;;  %v602_v51 = vadd.f32 %v1536_v47, %v409_v31  ;;  %v596_v52 = vpop.f32.mrb[9].mxu0  ;;  %v671_v31 = vld [vmem:[%s2366_s3 + $0x20] sm:$0xff]  ;;  %v680_v40 = vld [vmem:[%s2366_s3 + $0x68] sm:$0xff]  ;;  %v707_v44 = vpop.permute.xlu1 %706 }
 0x101   : > { %v657_v53 = vmax.f32 %v587_v43, %v641_v46  ;;  %v597_v54 = vadd.f32 %v596_v52, %v404_v34  ;;  %1702 = vmatprep.subr.bf16.mxu1 %v1701_v48  ;;  %v674_v34 = vld [vmem:[%s2366_s3 + $0x38] sm:$0xff]  ;;  %v956_v43 = vld [vmem:[%s2368_s5] sm:$0xff] }
 0x102   : > { %v644_v55 = vmul.f32 0.01, %v602_v51  ;;  %1704 = vmatpush3.bf16.msra.mxu1 %v1701_v48  ;;  %1634 = vmatprep.mubr.f32.mxu0 %v956_v43 }
 0x103   : > { %v643_v56 = vmul.f32 0.01, %v597_v54  ;;  %v1539_v57 = vpop.f32.mrb[10].mxu0  ;;  %v1705_v58 = vpack.c.bf16 %v658_v50, %v657_v53 }
 0x104   : > { %v660_v59 = vmax.f32 %v602_v51, %v644_v55  ;;  %v612_v60 = vadd.f32 %v1539_v57, %v419_v45  ;;  %v606_v61 = vpop.f32.mrb[11].mxu0  ;;  %v702_v45 = vpop.permute.xlu0 %701 }
 0x105   : > { %v659_v63 = vmax.f32 %v597_v54, %v643_v56  ;;  %v607_v0 = vadd.f32 %v606_v61, %v414_v49  ;;  %1706 = vmatprep.subr.bf16.mxu1 %v1705_v58  ;;  %v717_v46 = vpop.permute.xlu1 %716 }
 0x106   : > { %v646_v2 = vmul.f32 0.01, %v612_v60  ;;  %1708 = vmatpush3.bf16.msra.mxu1 %v1705_v58 }
 0x107   : > { %v645_v3 = vmul.f32 0.01, %v607_v0  ;;  %v1542_v4 = vpop.f32.mrb[12].mxu0  ;;  %v1709_v5 = vpack.c.bf16 %v660_v59, %v659_v63 }
 0x108   : > { %v662_v6 = vmax.f32 %v612_v60, %v646_v2  ;;  %v622_v7 = vadd.f32 %v1542_v4, %v429_v62  ;;  %v616_v8 = vpop.f32.mrb[13].mxu0  ;;  %v712_v47 = vpop.permute.xlu0 %711 }
 0x109   : > { %v661_v9 = vmax.f32 %v607_v0, %v645_v3  ;;  %v617_v10 = vadd.f32 %v616_v8, %v424_v1  ;;  %1710 = vmatprep.subr.bf16.mxu1 %v1709_v5  ;;  %v727_v48 = vpop.permute.xlu1 %726 }
 0x10a   : > { %v648_v11 = vmul.f32 0.01, %v622_v7  ;;  %1712 = vmatpush3.bf16.msra.mxu1 %v1709_v5 }
 0x10b   : > { %v647_v13 = vmul.f32 0.01, %v617_v10  ;;  %v1545_v14 = vpop.f32.mrb[14].mxu0  ;;  %v1713_v15 = vpack.c.bf16 %v662_v6, %v661_v9 }
 0x10c   : > { %v664_v17 = vmax.f32 %v622_v7, %v648_v11  ;;  %v632_v18 = vadd.f32 %v1545_v14, %v439_v12  ;;  %v626_v19 = vpop.f32.mrb[15].mxu0  ;;  %v722_v49 = vpop.permute.xlu0 %721 }
 0x10d   : > { %v663_v20 = vmax.f32 %v617_v10, %v647_v13  ;;  %v627_v21 = vadd.f32 %v626_v19, %v434_v16  ;;  %1714 = vmatprep.subr.bf16.mxu1 %v1713_v15  ;;  %v737_v55 = vpop.permute.xlu1 %736 }
 0x10e   : > { %v650_v22 = vmul.f32 0.01, %v632_v18  ;;  %1716 = vmatpush3.bf16.msra.mxu1 %v1713_v15 }
 0x10f   : > { %v649_v23 = vmul.f32 0.01, %v627_v21  ;;  %v1717_v24 = vpack.c.bf16 %v664_v17, %v663_v20 }
 0x110   : > { %v666_v25 = vmax.f32 %v632_v18, %v650_v22  ;;  %v732_v58 = vpop.permute.xlu0 %731 }
 0x111   : > { %v665_v26 = vmax.f32 %v627_v21, %v649_v23  ;;  %1718 = vmatprep.subr.bf16.mxu1 %v1717_v24  ;;  %v747_v7 = vpop.permute.xlu1 %746 }
 0x112   : > { %1720 = vmatpush3.bf16.msra.mxu1 %v1717_v24 }
 0x113   : > { %v1721_v27 = vpack.c.bf16 %v666_v25, %v665_v26 }
 0x114   : > { %v742_v10 = vpop.permute.xlu0 %741 }
 0x115   : > { %1722 = vmatprep.subr.bf16.mxu1 %v1721_v27  ;;  %v757_v21 = vpop.permute.xlu1 %756 }
 0x116   : > { %1724 = vmatpush3.bf16.msra.mxu1 %v1721_v27 }
 0x118   : > { %v752_v25 = vpop.permute.xlu0 %751 }
 0x119   : > { %1579 = vmatmul.mubr.f32.vlgmr.msra.gmra.mrb[0].mxu1 %v668_v28 }
 0x11a   : > { %1581 = vmatprep.mubr.f32.mxu1 %v669_v29 }
 0x11d   : > { %1582 = vmatmul.mubr.f32.gmra.mrb[2].mxu1 %v670_v30 }
 0x11e   : > { %1584 = vmatprep.mubr.f32.mxu1 %v671_v31 }
 0x121   : > { %1585 = vmatmul.mubr.f32.gmra.mrb[4].mxu1 %v672_v32 }
 0x122   : > { %1587 = vmatprep.mubr.f32.mxu1 %v673_v33 }
 0x125   : > { %1588 = vmatmul.mubr.f32.gmra.mrb[6].mxu1 %v674_v34 }
 0x126   : > { %1590 = vmatprep.mubr.f32.mxu1 %v675_v35 }
 0x129   : > { %1591 = vmatmul.mubr.f32.gmra.mrb[8].mxu1 %v676_v36 }
 0x12a   : > { %1593 = vmatprep.mubr.f32.mxu1 %v677_v37 }
 0x12d   : > { %1594 = vmatmul.mubr.f32.gmra.mrb[10].mxu1 %v678_v38  ;;  %v767_v38 = vpop.permute.xlu1 %766 }
 0x12e   : > { %1596 = vmatprep.mubr.f32.mxu1 %v679_v39 }
 0x131   : > { %1597 = vmatmul.mubr.f32.gmra.mrb[12].mxu1 %v680_v40 }
 0x132   : > { %1599 = vmatprep.mubr.f32.mxu1 %v681_v41  ;;  %v762_v41 = vpop.permute.xlu0 %761 }
 0x135   : > { %1600 = vmatmul.mubr.f32.gmra.mrb[14].mxu1 %v682_v42 }
 0x1ec   : > { %v1580_v50 = vpop.f32.mrb[0].mxu1 }
 0x1ed   : > { %v851_v51 = vadd.f32 %v1580_v50, %v707_v44  ;;  %v845_v52 = vpop.f32.mrb[1].mxu1 }
 0x1ee   : > { %v846_v53 = vadd.f32 %v845_v52, %v702_v45  ;;  %v777_v52 = vpop.permute.xlu1 %776 }
 0x1ef   : > { %v925_v54 = vmul.f32 0.01, %v851_v51 }
 0x1f0   : > { %v924_v56 = vmul.f32 0.01, %v846_v53  ;;  %v1583_v57 = vpop.f32.mrb[2].mxu1 }
 0x1f1   : > { %v941_v59 = vmax.f32 %v851_v51, %v925_v54  ;;  %v861_v60 = vadd.f32 %v1583_v57, %v717_v46  ;;  %v855_v61 = vpop.f32.mrb[3].mxu1 }
 0x1f2   : > { %v940_v62 = vmax.f32 %v846_v53, %v924_v56  ;;  %v856_v63 = vadd.f32 %v855_v61, %v712_v47  ;;  %v772_v56 = vpop.permute.xlu0 %771 }
 0x1f3   : > { %v927_v0 = vmul.f32 0.01, %v861_v60 }
 0x1f4   : > { %v926_v1 = vmul.f32 0.01, %v856_v63  ;;  %v1586_v2 = vpop.f32.mrb[4].mxu1  ;;  %v1725_v3 = vpack.c.bf16 %v941_v59, %v940_v62 }
 0x1f5   : > { %v943_v4 = vmax.f32 %v861_v60, %v927_v0  ;;  %v871_v5 = vadd.f32 %v1586_v2, %v727_v48  ;;  %v865_v6 = vpop.f32.mrb[5].mxu1 }
 0x1f6   : > { %v942_v8 = vmax.f32 %v856_v63, %v926_v1  ;;  %v866_v9 = vadd.f32 %v865_v6, %v722_v49  ;;  %1726 = vmatprep.subr.bf16.mxu0 %v1725_v3  ;;  %v959_v6 = vld [vmem:[%s2368_s5 + $0x18] sm:$0xff] }
 0x1f7   : > { %v929_v11 = vmul.f32 0.01, %v871_v5  ;;  %1728 = vmatpush3.bf16.msra.mxu0 %v1725_v3 }
 0x1f8   : > { %v928_v12 = vmul.f32 0.01, %v866_v9  ;;  %v1589_v13 = vpop.f32.mrb[6].mxu1  ;;  %v1729_v14 = vpack.c.bf16 %v943_v4, %v942_v8  ;;  %v957_v4 = vld [vmem:[%s2368_s5 + $0x8] sm:$0xff] }
 0x1f9   : > { %v945_v15 = vmax.f32 %v871_v5, %v929_v11  ;;  %v881_v16 = vadd.f32 %v1589_v13, %v737_v55  ;;  %v875_v17 = vpop.f32.mrb[7].mxu1  ;;  %v958_v5 = vld [vmem:[%s2368_s5 + $0x10] sm:$0xff]  ;;  %v961_v8 = vld [vmem:[%s2368_s5 + $0x28] sm:$0xff]  ;;  %v964_v11 = vld [vmem:[%s2368_s5 + $0x40] sm:$0xff] }
 0x1fa   : > { %v944_v18 = vmax.f32 %v866_v9, %v928_v12  ;;  %v876_v19 = vadd.f32 %v875_v17, %v732_v58  ;;  %1730 = vmatprep.subr.bf16.mxu0 %v1729_v14  ;;  %v962_v9 = vld [vmem:[%s2368_s5 + $0x30] sm:$0xff]  ;;  %v965_v12 = vld [vmem:[%s2368_s5 + $0x48] sm:$0xff] }
 0x1fb   : > { %v931_v20 = vmul.f32 0.01, %v881_v16  ;;  %1732 = vmatpush3.bf16.msra.mxu0 %v1729_v14  ;;  %v966_v13 = vld [vmem:[%s2368_s5 + $0x50] sm:$0xff]  ;;  %v967_v14 = vld [vmem:[%s2368_s5 + $0x58] sm:$0xff] }
 0x1fc   : > { %v930_v22 = vmul.f32 0.01, %v876_v19  ;;  %v1592_v23 = vpop.f32.mrb[8].mxu1  ;;  %v1733_v24 = vpack.c.bf16 %v945_v15, %v944_v18  ;;  %v968_v15 = vld [vmem:[%s2368_s5 + $0x60] sm:$0xff]  ;;  %v970_v17 = vld [vmem:[%s2368_s5 + $0x70] sm:$0xff]  ;;  %v971_v18 = vld [vmem:[%s2368_s5 + $0x78] sm:$0xff] }
 0x1fd   : > { %v947_v26 = vmax.f32 %v881_v16, %v931_v20  ;;  %v891_v27 = vadd.f32 %v1592_v23, %v747_v7  ;;  %v885_v28 = vpop.f32.mrb[9].mxu1  ;;  %v960_v7 = vld [vmem:[%s2368_s5 + $0x20] sm:$0xff]  ;;  %v969_v16 = vld [vmem:[%s2368_s5 + $0x68] sm:$0xff]  ;;  %v1893_v20 = vmov 0.0  }
 0x1fe   : > { %v946_v29 = vmax.f32 %v876_v19, %v930_v22  ;;  %v886_v30 = vadd.f32 %v885_v28, %v742_v10  ;;  %1734 = vmatprep.subr.bf16.mxu0 %v1733_v24  ;;  %v963_v10 = vld [vmem:[%s2368_s5 + $0x38] sm:$0xff]  ;;  %v1891_v19 = vmov 0.0|0.0   ;;  %1690 = vmatprep.mubr.msk.f32.mxu1 %vm1892_vm1, %v1893_v20  ;;  %v991_v22 = vpop.permute.xlu0 %990 }
 0x1ff   : > { %v933_v31 = vmul.f32 0.01, %v891_v27  ;;  %1736 = vmatpush3.bf16.msra.mxu0 %v1733_v24  ;;  %1757 = vmatprep.subr.bf16.mxu1 %v1891_v19 }
 0x200   : > { %v932_v32 = vmul.f32 0.01, %v886_v30  ;;  %v1595_v33 = vpop.f32.mrb[10].mxu1  ;;  %v1737_v34 = vpack.c.bf16 %v947_v26, %v946_v29 }
 0x201   : > { %v949_v35 = vmax.f32 %v891_v27, %v933_v31  ;;  %v901_v36 = vadd.f32 %v1595_v33, %v757_v21  ;;  %v895_v37 = vpop.f32.mrb[11].mxu1  ;;  %v996_v21 = vpop.permute.xlu1 %995 }
 0x202   : > { %v948_v39 = vmax.f32 %v886_v30, %v932_v32  ;;  %v896_v40 = vadd.f32 %v895_v37, %v752_v25  ;;  %1738 = vmatprep.subr.bf16.mxu0 %v1737_v34  ;;  %v1001_v24 = vpop.permute.xlu0 %1000 }
 0x203   : > { %v935_v42 = vmul.f32 0.01, %v901_v36  ;;  %1740 = vmatpush3.bf16.msra.mxu0 %v1737_v34 }
 0x204   : > { %v934_v43 = vmul.f32 0.01, %v896_v40  ;;  %v1598_v44 = vpop.f32.mrb[12].mxu1  ;;  %v1741_v45 = vpack.c.bf16 %v949_v35, %v948_v39 }
 0x205   : > { %v951_v46 = vmax.f32 %v901_v36, %v935_v42  ;;  %v911_v47 = vadd.f32 %v1598_v44, %v767_v38  ;;  %v905_v48 = vpop.f32.mrb[13].mxu1  ;;  %v1006_v23 = vpop.permute.xlu1 %1005 }
 0x206   : > { %v950_v49 = vmax.f32 %v896_v40, %v934_v43  ;;  %v906_v50 = vadd.f32 %v905_v48, %v762_v41  ;;  %1742 = vmatprep.subr.bf16.mxu0 %v1741_v45  ;;  %v1011_v26 = vpop.permute.xlu0 %1010 }
 0x207   : > { %v937_v51 = vmul.f32 0.01, %v911_v47  ;;  %1744 = vmatpush3.bf16.msra.mxu0 %v1741_v45 }
 0x208   : > { %v936_v53 = vmul.f32 0.01, %v906_v50  ;;  %v1601_v54 = vpop.f32.mrb[14].mxu1  ;;  %v1745_v55 = vpack.c.bf16 %v951_v46, %v950_v49 }
 0x209   : > { %v953_v57 = vmax.f32 %v911_v47, %v937_v51  ;;  %v921_v58 = vadd.f32 %v1601_v54, %v777_v52  ;;  %v915_v59 = vpop.f32.mrb[15].mxu1  ;;  %v1016_v25 = vpop.permute.xlu1 %1015 }
 0x20a   : > { %v952_v60 = vmax.f32 %v906_v50, %v936_v53  ;;  %v916_v61 = vadd.f32 %v915_v59, %v772_v56  ;;  %1746 = vmatprep.subr.bf16.mxu0 %v1745_v55  ;;  %v1021_v35 = vpop.permute.xlu0 %1020 }
 0x20b   : > { %v939_v62 = vmul.f32 0.01, %v921_v58  ;;  %1748 = vmatpush3.bf16.msra.mxu0 %v1745_v55 }
 0x20c   : > { %v938_v63 = vmul.f32 0.01, %v916_v61  ;;  %v1749_v0 = vpack.c.bf16 %v953_v57, %v952_v60 }
 0x20d   : > { %v955_v1 = vmax.f32 %v921_v58, %v939_v62  ;;  %v1026_v32 = vpop.permute.xlu1 %1025 }
 0x20e   : > { %v954_v2 = vmax.f32 %v916_v61, %v938_v63  ;;  %1750 = vmatprep.subr.bf16.mxu0 %v1749_v0  ;;  %v1031_v51 = vpop.permute.xlu0 %1030 }
 0x20f   : > { %1752 = vmatpush3.bf16.msra.mxu0 %v1749_v0 }
 0x210   : > { %v1753_v3 = vpack.c.bf16 %v955_v1, %v954_v2 }
 0x211   : > { %v1036_v48 = vpop.permute.xlu1 %1035 }
 0x212   : > { %1754 = vmatprep.subr.bf16.mxu0 %v1753_v3  ;;  %v1041_v2 = vpop.permute.xlu0 %1040 }
 0x213   : > { %1756 = vmatpush3.bf16.msra.mxu0 %v1753_v3 }
 0x215   : > { %v1046_v62 = vpop.permute.xlu1 %1045 }
 0x216   : > { %1635 = vmatmul.mubr.f32.vlgmr.msra.gmra.mrb[16].mxu0 %v957_v4 }
 0x217   : > { %1637 = vmatprep.mubr.f32.mxu0 %v958_v5 }
 0x21a   : > { %1638 = vmatmul.mubr.f32.gmra.mrb[18].mxu0 %v959_v6 }
 0x21b   : > { %1640 = vmatprep.mubr.f32.mxu0 %v960_v7 }
 0x21e   : > { %1641 = vmatmul.mubr.f32.gmra.mrb[20].mxu0 %v961_v8 }
 0x21f   : > { %1643 = vmatprep.mubr.f32.mxu0 %v962_v9 }
 0x222   : > { %1644 = vmatmul.mubr.f32.gmra.mrb[22].mxu0 %v963_v10 }
 0x223   : > { %1646 = vmatprep.mubr.f32.mxu0 %v964_v11 }
 0x226   : > { %1647 = vmatmul.mubr.f32.gmra.mrb[24].mxu0 %v965_v12 }
 0x227   : > { %1649 = vmatprep.mubr.f32.mxu0 %v966_v13 }
 0x22a   : > { %1650 = vmatmul.mubr.f32.gmra.mrb[26].mxu0 %v967_v14 }
 0x22b   : > { %1652 = vmatprep.mubr.f32.mxu0 %v968_v15  ;;  %v1056_v15 = vpop.permute.xlu1 %1055 }
 0x22e   : > { %1653 = vmatmul.mubr.f32.gmra.mrb[28].mxu0 %v969_v16 }
 0x22f   : > { %1655 = vmatprep.mubr.f32.mxu0 %v970_v17 }
 0x232   : > { %1656 = vmatmul.mubr.f32.gmra.mrb[30].mxu0 %v971_v18  ;;  %v1051_v18 = vpop.permute.xlu0 %1050 }
 0x2e9   : > { %v1636_v27 = vpop.f32.mrb[16].mxu0 }
 0x2ea   : > { %v1140_v28 = vadd.f32 %v1636_v27, %v996_v21  ;;  %v1134_v29 = vpop.f32.mrb[17].mxu0 }
 0x2eb   : > { %v1135_v30 = vadd.f32 %v1134_v29, %v991_v22 }
 0x2ec   : > { %v1214_v31 = vmul.f32 0.01, %v1140_v28 }
 0x2ed   : > { %v1213_v33 = vmul.f32 0.01, %v1135_v30  ;;  %v1639_v34 = vpop.f32.mrb[18].mxu0 }
 0x2ee   : > { %v1230_v36 = vmax.f32 %v1140_v28, %v1214_v31  ;;  %v1150_v37 = vadd.f32 %v1639_v34, %v1006_v23  ;;  %v1144_v38 = vpop.f32.mrb[19].mxu0  ;;  %v1061_v34 = vpop.permute.xlu0 %1060 }
 0x2ef   : > { %v1229_v39 = vmax.f32 %v1135_v30, %v1213_v33  ;;  %v1145_v40 = vadd.f32 %v1144_v38, %v1001_v24  ;;  %v1066_v30 = vpop.permute.xlu1 %1065 }
 0x2f0   : > { %v1216_v41 = vmul.f32 0.01, %v1150_v37 }
 0x2f1   : > { %v1758_v42 = vpack.c.bf16 %v1230_v36, %v1229_v39  ;;  %v1215_v43 = vmul.f32 0.01, %v1145_v40  ;;  %v1642_v44 = vpop.f32.mrb[20].mxu0 }
 0x2f2   : > { %v1232_v45 = vmax.f32 %v1150_v37, %v1216_v41  ;;  %v1160_v46 = vadd.f32 %v1642_v44, %v1016_v25  ;;  %v1154_v47 = vpop.f32.mrb[21].mxu0 }
 0x2f3   : > { %v1231_v49 = vmax.f32 %v1145_v40, %v1215_v43  ;;  %v1155_v50 = vadd.f32 %v1154_v47, %v1011_v26  ;;  %1759 = vmatpush3.bf16.msra.mxu1 %v1758_v42  ;;  %v1250_v47 = vpop.permute.xlu0 %1249 }
 0x2f4   : > { %v1218_v52 = vmul.f32 0.01, %v1160_v46  ;;  %1760 = vmatprep.subr.bf16.mxu1 %v1891_v19 }
 0x2f5   : > { %v1761_v53 = vpack.c.bf16 %v1232_v45, %v1231_v49  ;;  %v1217_v54 = vmul.f32 0.01, %v1155_v50  ;;  %v1645_v55 = vpop.f32.mrb[22].mxu0 }
 0x2f6   : > { %v1234_v56 = vmax.f32 %v1160_v46, %v1218_v52  ;;  %v1170_v57 = vadd.f32 %v1645_v55, %v1026_v32  ;;  %v1164_v58 = vpop.f32.mrb[23].mxu0  ;;  %v1245_v46 = vld [vmem:[%s2370_s7] sm:$0xff] }
 0x2f7   : > { %v1233_v59 = vmax.f32 %v1155_v50, %v1217_v54  ;;  %v1165_v60 = vadd.f32 %v1164_v58, %v1021_v35  ;;  %1762 = vmatpush3.bf16.msra.mxu1 %v1761_v53 }
 0x2f8   : > { %v1220_v61 = vmul.f32 0.01, %v1170_v57  ;;  %1763 = vmatprep.subr.bf16.mxu1 %v1891_v19 }
 0x2f9   : > { %v1764_v63 = vpack.c.bf16 %v1234_v56, %v1233_v59  ;;  %v1219_v0 = vmul.f32 0.01, %v1165_v60  ;;  %v1648_v1 = vpop.f32.mrb[24].mxu0 }
 0x2fa   : > { %v1236_v3 = vmax.f32 %v1170_v57, %v1220_v61  ;;  %v1180_v4 = vadd.f32 %v1648_v1, %v1036_v48  ;;  %v1174_v5 = vpop.f32.mrb[25].mxu0 }
 0x2fb   : > { %v1235_v6 = vmax.f32 %v1165_v60, %v1219_v0  ;;  %v1175_v7 = vadd.f32 %v1174_v5, %v1031_v51  ;;  %1765 = vmatpush3.bf16.msra.mxu1 %v1764_v63 }
 0x2fc   : > { %v1222_v8 = vmul.f32 0.01, %v1180_v4  ;;  %1766 = vmatprep.subr.bf16.mxu1 %v1891_v19 }
 0x2fd   : > { %v1767_v9 = vpack.c.bf16 %v1236_v3, %v1235_v6  ;;  %v1221_v10 = vmul.f32 0.01, %v1175_v7  ;;  %v1651_v11 = vpop.f32.mrb[26].mxu0 }
 0x2fe   : > { %v1238_v12 = vmax.f32 %v1180_v4, %v1222_v8  ;;  %v1190_v13 = vadd.f32 %v1651_v11, %v1046_v62  ;;  %v1184_v14 = vpop.f32.mrb[27].mxu0 }
 0x2ff   : > { %v1237_v16 = vmax.f32 %v1175_v7, %v1221_v10  ;;  %v1185_v17 = vadd.f32 %v1184_v14, %v1041_v2  ;;  %1768 = vmatpush3.bf16.msra.mxu1 %v1767_v9 }
 0x300   : > { %v1224_v20 = vmul.f32 0.01, %v1190_v13  ;;  %1769 = vmatprep.subr.bf16.mxu1 %v1891_v19 }
 0x301   : > { %v1770_v21 = vpack.c.bf16 %v1238_v12, %v1237_v16  ;;  %v1223_v22 = vmul.f32 0.01, %v1185_v17  ;;  %v1654_v23 = vpop.f32.mrb[28].mxu0 }
 0x302   : > { %v1240_v24 = vmax.f32 %v1190_v13, %v1224_v20  ;;  %v1200_v25 = vadd.f32 %v1654_v23, %v1056_v15  ;;  %v1194_v26 = vpop.f32.mrb[29].mxu0 }
 0x303   : > { %v1239_v27 = vmax.f32 %v1185_v17, %v1223_v22  ;;  %v1195_v28 = vadd.f32 %v1194_v26, %v1051_v18  ;;  %1771 = vmatpush3.bf16.msra.mxu1 %v1770_v21 }
 0x304   : > { %v1226_v29 = vmul.f32 0.01, %v1200_v25  ;;  %1772 = vmatprep.subr.bf16.mxu1 %v1891_v19 }
 0x305   : > { %v1773_v31 = vpack.c.bf16 %v1240_v24, %v1239_v27  ;;  %v1225_v32 = vmul.f32 0.01, %v1195_v28  ;;  %v1657_v33 = vpop.f32.mrb[30].mxu0 }
 0x306   : > { %v1242_v35 = vmax.f32 %v1200_v25, %v1226_v29  ;;  %v1210_v36 = vadd.f32 %v1657_v33, %v1066_v30  ;;  %v1204_v37 = vpop.f32.mrb[31].mxu0 }
 0x307   : > { %v1241_v38 = vmax.f32 %v1195_v28, %v1225_v32  ;;  %v1205_v39 = vadd.f32 %v1204_v37, %v1061_v34  ;;  %1774 = vmatpush3.bf16.msra.mxu1 %v1773_v31 }
 0x308   : > { %v1228_v40 = vmul.f32 0.01, %v1210_v36  ;;  %1775 = vmatprep.subr.bf16.mxu1 %v1891_v19 }
 0x309   : > { %v1776_v41 = vpack.c.bf16 %v1242_v35, %v1241_v38  ;;  %v1227_v42 = vmul.f32 0.01, %v1205_v39 }
 0x30a   : > { %v1244_v43 = vmax.f32 %v1210_v36, %v1228_v40 }
 0x30b   : > { %v1243_v44 = vmax.f32 %v1205_v39, %v1227_v42  ;;  %1777 = vmatpush3.bf16.msra.mxu1 %v1776_v41 }
 0x30c   : > { %1778 = vmatprep.subr.bf16.mxu1 %v1891_v19 }
 0x30d   : > { %v1779_v45 = vpack.c.bf16 %v1244_v43, %v1243_v44 }
 0x30f   : > { %1780 = vmatpush3.bf16.msra.mxu1 %v1779_v45 }
 0x312   : > { %1691 = vmatmul.mubr.f32.vlgmr.msra.gmra.mrb[16].mxu1 %v1245_v46 }
 0x3e5   : > { %v1318_v48 = vpop.f32.mrb[16].mxu1 }
 0x3e6   : > { %v1319_v49 = vadd.f32 %v1318_v48, %v1250_v47  ;;  %v1692_v50 = vpop.f32.mrb[17].mxu1 }
 0x3e8   : > { %1322 = vst [vmem:[%s323_s21] sm:$0xff] %v1319_v49 }
 0x3e9   : > { %1839 = shalt.err (!%p1836_p3)
}
 0x3ea   : > { %s1840_s27 = scalar_lea.hbm %s2321_s25, 128  ;;  %s1844_s21 = scalar_lea.hbm %s2372_s9, 256 }
 0x3eb   : > { %p1841_p4 = scmp.ne.s32.totalorder %s2321_s25, %s1840_s27  ;;  %p1845_p9 = scmp.lt.u32.totalorder %s2321_s25, %s2372_s9 }
 0x3ec   : > { %p1846_p10 = scmp.lt.u32.totalorder %s1844_s21, %s1840_s27  ;;  %p1848_p12 = scmp.lt.u32.totalorder %s1840_s27, %s2321_s25 }
 0x3ed   : > { %p1842_p7 = pnand %p1841_p4, %p1983_p5 }
 0x3ee   : > { %p1847_p11 = por %p1846_p10, %p1845_p9 }
 0x3ef   : > { %p1843_p8 = pneg %p1842_p7 }
 0x3f0   : > { %p1849_p13 = por %p1848_p12, %p1847_p11 }
 0x3f2   : > { %p1850_p0 = pnand %p1849_p13, %p1843_p8 }
 0x3f4   : > { %1853 = shalt.err (!%p1850_p0)
}
 0x3f5   : > { %1781 = dma.vmem_to_hbm [thread:$0]  (%p1983_p5), %s2323_s22, 128, %s2321_s25, %s1324_s26  }
 0x3f6 PF: > { %p1787_p1 = scmp.ge.s32.totalorder %s1888_s12, 2  ;;  %s1349_s28 = sand.u32 1, %s1876_s30  }
 0x3f7   : > { %s1350_s13 = scalar_lea.sflag [#allocation3], %s1349_s28 }
 0x3f8   : > { %p1784_p2 = pnand %p1787_p1, %p1987_p6 }
 0x3fa   : > { %1871 = dma.done.wait (!%p1784_p2), %s1350_s13, 128  }
 0x3fb   : > { %1873 = vsyncadd (!%p1784_p2), %s1350_s13, 4294967168  ;;  %p19_p3 = scmp.ge.s32.totalorder %s1970_s15, 4   ;;  %s2375_s30 = smov %s1880_s10 }
 0x3fc   : > { %s2376_s10 = smov %s1884_s11  ;;  %s2377_s11 = smov %s1981_s18 }
 0x3fd   : > { %s2378_s12 = smov %s1970_s15  ;;  %21 = sbr.rel (!%p19_p3) target bundleno = 3 (0x3), region = 91 }
 0x404   :  { %1355 = vsyncpa [#allocation3], 1 }
 0x405   :  { %1357 = vsyncpa [#allocation3 + $0x1], 1 }

</bundles_post_ra>
